<compile_context>
chip_gen: v7x
topology: tpu7x:2x2x1
jax: 0.10.0
libtpu: 0.0.40
codegen_flags: <defaults>
</compile_context>

<pallas_src>
import functools

import jax
import jax.numpy as jnp
from jax import lax
from jax.experimental import pallas as pl
from jax.experimental.pallas import tpu as pltpu

_INV_SQRT2 = 0.7071067811865476
_BN_EPS = 1e-5  # PyTorch BatchNorm2d default


def _round_up(x, m):
    return (x + m - 1) // m * m


# ---------------- Pass 1: conv as im2col matmul + per-tile BN partial statistics ----------------
def _conv_stats_kernel(p_ref, w_ref, y_ref, stats_ref):
    # p: [TM, Kp] (bf16/f32), w: [Kp, Cp] (bf16/f32), y: [TM, Cp] f32, stats: [1, 2, Cp] f32
    y = jnp.dot(p_ref[...], w_ref[...], preferred_element_type=jnp.float32)
    y_ref[...] = y
    # Per-tile partial stats; zero-padded rows/cols contribute exactly 0 (no bias term).
    stats_ref[0, 0:1, :] = jnp.sum(y, axis=0, keepdims=True)
    stats_ref[0, 1:2, :] = jnp.sum(y * y, axis=0, keepdims=True)


# ---------------- Pass 2: normalize + affine (+ exact erf GELU) ----------------
def _bn_act_kernel(y_ref, scale_ref, shift_ref, o_ref, *, apply_gelu):
    y = y_ref[...] * scale_ref[...] + shift_ref[...]
    if apply_gelu:
        y = 0.5 * y * (1.0 + lax.erf(y * _INV_SQRT2))  # nn.GELU() default (erf form)
    o_ref[...] = y.astype(o_ref.dtype)


def _conv3x3_s2_bn_act(x_nhwc, w_hwio, gamma, beta, *, apply_gelu, compute_dtype,
                       out_dtype, block_m=1024):
    """3x3 stride-2 pad-1 conv + training-mode BN (+GELU) on NHWC input, tiled over M."""
    N, H, W, Cin = x_nhwc.shape
    Cout = w_hwio.shape[-1]
    Ho, Wo = (H + 1) // 2, (W + 1) // 2        # PyTorch Conv2d(k=3, s=2, p=1): ceil(H/2)

    M, K = N * Ho * Wo, 9 * Cin
    Kp = _round_up(K, 128)                     # lane-dense contraction dim (aligned loads)
    Cp = _round_up(Cout, 128)                  # lane-dense output dim (unmasked stores)
    TM = min(block_m, _round_up(M, 8))         # M tile; multiple of 8 sublanes
    Mp = _round_up(M, TM)
    n_tiles = Mp // TM
    cdt = jnp.dtype(compute_dtype)

    # im2col glue (XLA): pad by 1, gather the 9 stride-2 taps, flatten, pad to lane-dense shape.
    # TODO(synk): move the halo/patch extraction into the kernel (manual DMA of input row strips
    # + 9 accumulated matmuls) to avoid materializing the patch matrix in HBM.
    xp = jnp.pad(x_nhwc, ((0, 0), (1, 1), (1, 1), (0, 0)))
    cols = [xp[:, kh:kh + 2 * Ho:2, kw:kw + 2 * Wo:2, :]
            for kh in range(3) for kw in range(3)]
    patches = jnp.concatenate(cols, axis=-1).reshape(M, K)
    patches = jnp.pad(patches, ((0, Mp - M), (0, Kp - K))).astype(cdt)

    wmat = w_hwio.reshape(K, Cout).astype(jnp.float32)       # (kh,kw,cin) order matches patches
    wmat = jnp.pad(wmat, ((0, Kp - K), (0, Cp - Cout))).astype(cdt)
    # NOTE: conv bias intentionally dropped — cancelled exactly by BN batch-mean subtraction.

    cparams = pltpu.CompilerParams(
        dimension_semantics=("parallel",),
        vmem_limit_bytes=32 * 1024 * 1024)

    bytes1 = (Mp * Kp * cdt.itemsize + Kp * Cp * cdt.itemsize
              + Mp * Cp * 4 + n_tiles * 2 * Cp * 4)
    y_pad, stats = pl.pallas_call(
        _conv_stats_kernel,
        out_shape=(jax.ShapeDtypeStruct((Mp, Cp), jnp.float32),
                   jax.ShapeDtypeStruct((n_tiles, 2, Cp), jnp.float32)),
        grid=(n_tiles,),
        in_specs=[pl.BlockSpec((TM, Kp), lambda i: (i, 0)),
                  pl.BlockSpec((Kp, Cp), lambda i: (0, 0))],
        out_specs=(pl.BlockSpec((TM, Cp), lambda i: (i, 0)),
                   pl.BlockSpec((1, 2, Cp), lambda i: (i, 0, 0))),
        compiler_params=cparams,
        cost_estimate=pl.CostEstimate(flops=2 * Mp * Kp * Cp, transcendentals=0,
                                      bytes_accessed=bytes1),
    )(patches, wmat)

    # Finalize BN batch statistics (tiny [2, Cp] reduce) and fold gamma/beta into scale/shift.
    s = jnp.sum(stats, axis=0)
    mean = s[0] / M                                       # divide by the *real* row count
    var = jnp.maximum(s[1] / M - mean * mean, 0.0)        # biased variance (PyTorch training BN)
    g_p = jnp.pad(gamma.astype(jnp.float32), (0, Cp - Cout))
    b_p = jnp.pad(beta.astype(jnp.float32), (0, Cp - Cout))
    scale = g_p * lax.rsqrt(var + _BN_EPS)
    shift = b_p - mean * scale

    bytes2 = Mp * Cp * 4 + Mp * Cp * jnp.dtype(out_dtype).itemsize + 2 * Cp * 4
    out_pad = pl.pallas_call(
        functools.partial(_bn_act_kernel, apply_gelu=apply_gelu),
        out_shape=jax.ShapeDtypeStruct((Mp, Cp), out_dtype),
        grid=(n_tiles,),
        in_specs=[pl.BlockSpec((TM, Cp), lambda i: (i, 0)),
                  pl.BlockSpec((1, Cp), lambda i: (0, 0)),
                  pl.BlockSpec((1, Cp), lambda i: (0, 0))],
        out_specs=pl.BlockSpec((TM, Cp), lambda i: (i, 0)),
        compiler_params=cparams,
        cost_estimate=pl.CostEstimate(flops=4 * Mp * Cp,
                                      transcendentals=(Mp * Cp if apply_gelu else 0),
                                      bytes_accessed=bytes2),
    )(y_pad, scale.reshape(1, Cp), shift.reshape(1, Cp))

    return out_pad[:M, :Cout].reshape(N, Ho, Wo, Cout)


def stem_layer_forward(x_nchw, params, *, compute_dtype=jnp.bfloat16, block_m=1024):
    """Pallas StemLayer.forward. Input NCHW, output NHWC (channels_last), like the module."""
    x = jnp.transpose(x_nchw, (0, 2, 3, 1)).astype(compute_dtype)   # -> NHWC
    y = _conv3x3_s2_bn_act(x, params['w1'], params['g1'], params['be1'],
                           apply_gelu=True, compute_dtype=compute_dtype,
                           out_dtype=compute_dtype, block_m=block_m)
    y = _conv3x3_s2_bn_act(y, params['w2'], params['g2'], params['be2'],
                           apply_gelu=False, compute_dtype=compute_dtype,
                           out_dtype=jnp.float32, block_m=block_m)
    return y  # [N, ceil(H/2)/..., ceil(W/2)/..., out_chans], channels_last


# ----------------- pure-JAX reference (training-mode BN, with the conv bias) -----------------
def _ref_stage(x, w, b, g, be, apply_gelu):
    y = lax.conv_general_dilated(
        x, w, window_strides=(2, 2), padding=((1, 1), (1, 1)),
        dimension_numbers=('NHWC', 'HWIO', 'NHWC'),
        precision=lax.Precision.HIGHEST)
    y = y + b
    mu = jnp.mean(y, axis=(0, 1, 2), keepdims=True)
    var = jnp.mean((y - mu) ** 2, axis=(0, 1, 2), keepdims=True)
    y = (y - mu) * lax.rsqrt(var + _BN_EPS)
    y = y * g + be
    if apply_gelu:
        y = 0.5 * y * (1.0 + lax.erf(y * _INV_SQRT2))
    return y


def stem_layer_reference(x_nchw, params):
    x = jnp.transpose(x_nchw, (0, 2, 3, 1))
    y = _ref_stage(x, params['w1'], params['b1'], params['g1'], params['be1'], True)
    y = _ref_stage(y, params['w2'], params['b2'], params['g2'], params['be2'], False)
    return y


if __name__ == "__main__":
    # Small shapes consistent with the module: in_chans=4, out_chans=32 (mid=16), 16x16 spatial.
    N, Cin, H, W = 2, 4, 16, 16
    out_chans = 32
    mid = out_chans // 2

    key = jax.random.PRNGKey(0)
    ks = jax.random.split(key, 10)
    params = {
        # conv weights in HWIO layout (== PyTorch OIHW weight permuted (2,3,1,0))
        'w1': 0.2 * jax.random.normal(ks[0], (3, 3, Cin, mid), jnp.float32),
        'b1': 0.1 * jax.random.normal(ks[1], (mid,), jnp.float32),     # cancelled by BN
        'g1': 1.0 + 0.1 * jax.random.normal(ks[2], (mid,), jnp.float32),
        'be1': 0.1 * jax.random.normal(ks[3], (mid,), jnp.float32),
        'w2': 0.2 * jax.random.normal(ks[4], (3, 3, mid, out_chans), jnp.float32),
        'b2': 0.1 * jax.random.normal(ks[5], (out_chans,), jnp.float32),  # cancelled by BN
        'g2': 1.0 + 0.1 * jax.random.normal(ks[6], (out_chans,), jnp.float32),
        'be2': 0.1 * jax.random.normal(ks[7], (out_chans,), jnp.float32),
    }
    x = jax.random.normal(ks[8], (N, Cin, H, W), jnp.float32)   # NCHW, like PyTorch

    fwd_f32 = jax.jit(functools.partial(stem_layer_forward, compute_dtype=jnp.float32))
    fwd_bf16 = jax.jit(functools.partial(stem_layer_forward, compute_dtype=jnp.bfloat16))

    ref = jax.block_until_ready(stem_layer_reference(x, params))

    # 1) f32 path: strict check against the reference (proves structural changes are exact).
    out = jax.block_until_ready(fwd_f32(x, params))
    assert out.shape == (N, H // 4, W // 4, out_chans), out.shape
    assert bool(jnp.all(jnp.isfinite(out)))
    err = float(jnp.max(jnp.abs(out - ref)))
    assert err < 2e-2, f"f32 path: max abs error vs reference {err}"

    # 2) bf16 compute path (perf configuration): looser tolerance for bf16 matmul inputs /
    #    bf16 inter-stage activation, f32 accumulation.
    out_bf = jax.block_until_ready(fwd_bf16(x, params))
    assert out_bf.shape == ref.shape
    assert bool(jnp.all(jnp.isfinite(out_bf)))
    err_bf = float(jnp.max(jnp.abs(out_bf.astype(jnp.float32) - ref)))
    assert err_bf < 1e-1, f"bf16 path: max abs error vs reference {err_bf}"

    # 3) Odd spatial size: Conv2d(k=3, s=2, p=1) gives ceil(H/2) per stage (previous bug).
    x_odd = jax.random.normal(ks[9], (1, Cin, 15, 15), jnp.float32)
    out_odd = jax.block_until_ready(fwd_f32(x_odd, params))
    ref_odd = jax.block_until_ready(stem_layer_reference(x_odd, params))
    assert out_odd.shape == (1, 4, 4, out_chans), out_odd.shape
    err_odd = float(jnp.max(jnp.abs(out_odd - ref_odd)))
    assert err_odd < 2e-2, f"odd-size path: max abs error vs reference {err_odd}"

    print("KERNEL_OK")
</pallas_src>

<mosaic_0001>
module attributes {stable_mosaic.version = 11 : i64} {
  func.func @_conv_stats_kernel(%arg0: i32, %arg1: memref<128x128xf32, #tpu.memory_space<vmem>>, %arg2: memref<128x128xf32, #tpu.memory_space<vmem>>, %arg3: memref<128x128xf32, #tpu.memory_space<vmem>>, %arg4: memref<1x2x128xf32, #tpu.memory_space<vmem>>) attributes {dimension_semantics = [#tpu.dimension_semantics<parallel>], iteration_bounds = array<i64: 1>, scalar_prefetch = 0 : i64, scratch_operands = 0 : i64, tpu.core_type = #tpu.core_type<tc>, window_params = [{transform_indices = @transform_0, window_bounds = array<i64: 128, 128>}, {pipeline_mode = #tpu.pipeline_mode<synchronous>, transform_indices = @transform_1, window_bounds = array<i64: 128, 128>}, {transform_indices = @transform_2, window_bounds = array<i64: 128, 128>}, {transform_indices = @transform_3, window_bounds = array<i64: 1, 2, 128>}]} {
    %c0 = arith.constant 0 : index
    %c0_0 = arith.constant 0 : index
    %0 = vector.load %arg1[%c0, %c0_0] : memref<128x128xf32, #tpu.memory_space<vmem>>, vector<128x128xf32>
    %c0_1 = arith.constant 0 : index
    %c0_2 = arith.constant 0 : index
    %1 = vector.load %arg2[%c0_1, %c0_2] : memref<128x128xf32, #tpu.memory_space<vmem>>, vector<128x128xf32>
    %cst = arith.constant dense<0.000000e+00> : vector<128x128xf32>
    %2 = tpu.matmul %0, %1, %cst {dimension_numbers = #tpu.dot_dimension_numbers<[1], [0], [0], [1], [0, 0, 1, 1], [], []>} : vector<128x128xf32>, vector<128x128xf32>, vector<128x128xf32> -> vector<128x128xf32>
    %c0_3 = arith.constant 0 : index
    %c0_4 = arith.constant 0 : index
    %3 = vector.load %arg3[%c0_3, %c0_4] : memref<128x128xf32, #tpu.memory_space<vmem>>, vector<128x128xf32>
    tpu.vector_store %arg3[%c0_3, %c0_4], %2 {strides = array<i32>} : memref<128x128xf32, #tpu.memory_space<vmem>>, vector<128x128xf32>,
    %cst_5 = arith.constant dense<0.000000e+00> : vector<128xf32>
    %4 = vector.multi_reduction <add>, %2, %cst_5 [0] : vector<128x128xf32> to vector<128xf32>
    %5 = vector.shape_cast %4 : vector<128xf32> to vector<1x128xf32>
    %c0_6 = arith.constant 0 : index
    %c0_7 = arith.constant 0 : index
    %c0_8 = arith.constant 0 : index
    %6 = vector.load %arg4[%c0_6, %c0_7, %c0_8] : memref<1x2x128xf32, #tpu.memory_space<vmem>>, vector<1x1x128xf32>
    %7 = vector.shape_cast %6 : vector<1x1x128xf32> to vector<1x128xf32>
    %8 = vector.shape_cast %5 : vector<1x128xf32> to vector<1x1x128xf32>
    tpu.vector_store %arg4[%c0_6, %c0_7, %c0_8], %8 {strides = array<i32>} : memref<1x2x128xf32, #tpu.memory_space<vmem>>, vector<1x1x128xf32>,
    %9 = arith.mulf %2, %2 : vector<128x128xf32>
    %cst_9 = arith.constant dense<0.000000e+00> : vector<128xf32>
    %10 = vector.multi_reduction <add>, %9, %cst_9 [0] : vector<128x128xf32> to vector<128xf32>
    %11 = vector.shape_cast %10 : vector<128xf32> to vector<1x128xf32>
    %c0_10 = arith.constant 0 : index
    %c1 = arith.constant 1 : index
    %c0_11 = arith.constant 0 : index
    %12 = vector.load %arg4[%c0_10, %c1, %c0_11] : memref<1x2x128xf32, #tpu.memory_space<vmem>>, vector<1x1x128xf32>
    %13 = vector.shape_cast %12 : vector<1x1x128xf32> to vector<1x128xf32>
    %14 = vector.shape_cast %11 : vector<1x128xf32> to vector<1x1x128xf32>
    tpu.vector_store %arg4[%c0_10, %c1, %c0_11], %14 {strides = array<i32>} : memref<1x2x128xf32, #tpu.memory_space<vmem>>, vector<1x1x128xf32>,
    return
  }
  func.func @transform_0(%arg0: i32) -> (i32, i32) {
    %c0_i32 = arith.constant 0 : i32
    %c0_i32_0 = arith.constant 0 : i32
    return %arg0, %c0_i32 : i32, i32
  }
  func.func @transform_1(%arg0: i32) -> (i32, i32) {
    %c0_i32 = arith.constant 0 : i32
    %c0_i32_0 = arith.constant 0 : i32
    %c0_i32_1 = arith.constant 0 : i32
    return %c0_i32, %c0_i32_0 : i32, i32
  }
  func.func @transform_2(%arg0: i32) -> (i32, i32) {
    %c0_i32 = arith.constant 0 : i32
    %c0_i32_0 = arith.constant 0 : i32
    return %arg0, %c0_i32 : i32, i32
  }
  func.func @transform_3(%arg0: i32) -> (i32, i32, i32) {
    %c0_i32 = arith.constant 0 : i32
    %c0_i32_0 = arith.constant 0 : i32
    %c0_i32_1 = arith.constant 0 : i32
    return %arg0, %c0_i32, %c0_i32_0 : i32, i32, i32
  }
}

module attributes {stable_mosaic.version = 11 : i64} {
  func.func @_bn_act_kernel(%arg0: i32, %arg1: memref<128x128xf32, #tpu.memory_space<vmem>>, %arg2: memref<1x128xf32, #tpu.memory_space<vmem>>, %arg3: memref<1x128xf32, #tpu.memory_space<vmem>>, %arg4: memref<128x128xf32, #tpu.memory_space<vmem>>) attributes {dimension_semantics = [#tpu.dimension_semantics<parallel>], iteration_bounds = array<i64: 1>, scalar_prefetch = 0 : i64, scratch_operands = 0 : i64, tpu.core_type = #tpu.core_type<tc>, window_params = [{transform_indices = @transform_0, window_bounds = array<i64: 128, 128>}, {pipeline_mode = #tpu.pipeline_mode<synchronous>, transform_indices = @transform_1, window_bounds = array<i64: 1, 128>}, {pipeline_mode = #tpu.pipeline_mode<synchronous>, transform_indices = @transform_2, window_bounds = array<i64: 1, 128>}, {transform_indices = @transform_3, window_bounds = array<i64: 128, 128>}]} {
    %c0 = arith.constant 0 : index
    %c0_0 = arith.constant 0 : index
    %0 = vector.load %arg1[%c0, %c0_0] : memref<128x128xf32, #tpu.memory_space<vmem>>, vector<128x128xf32>
    %c0_1 = arith.constant 0 : index
    %c0_2 = arith.constant 0 : index
    %1 = vector.load %arg2[%c0_1, %c0_2] : memref<1x128xf32, #tpu.memory_space<vmem>>, vector<1x128xf32>
    %2 = vector.broadcast %1 : vector<1x128xf32> to vector<128x128xf32>
    %3 = arith.mulf %0, %2 : vector<128x128xf32>
    %c0_3 = arith.constant 0 : index
    %c0_4 = arith.constant 0 : index
    %4 = vector.load %arg3[%c0_3, %c0_4] : memref<1x128xf32, #tpu.memory_space<vmem>>, vector<1x128xf32>
    %5 = vector.broadcast %4 : vector<1x128xf32> to vector<128x128xf32>
    %6 = arith.addf %3, %5 : vector<128x128xf32>
    %cst = arith.constant 5.000000e-01 : f32
    %7 = vector.broadcast %cst : f32 to vector<128x128xf32>
    %8 = arith.mulf %7, %6 : vector<128x128xf32>
    %cst_5 = arith.constant 0.707106769 : f32
    %9 = vector.broadcast %cst_5 : f32 to vector<128x128xf32>
    %10 = arith.mulf %6, %9 : vector<128x128xf32>
    %11 = math.erf %10 : vector<128x128xf32>
    %cst_6 = arith.constant 1.000000e+00 : f32
    %12 = vector.broadcast %cst_6 : f32 to vector<128x128xf32>
    %13 = arith.addf %12, %11 : vector<128x128xf32>
    %14 = arith.mulf %8, %13 : vector<128x128xf32>
    %c0_7 = arith.constant 0 : index
    %c0_8 = arith.constant 0 : index
    %15 = vector.load %arg4[%c0_7, %c0_8] : memref<128x128xf32, #tpu.memory_space<vmem>>, vector<128x128xf32>
    tpu.vector_store %arg4[%c0_7, %c0_8], %14 {strides = array<i32>} : memref<128x128xf32, #tpu.memory_space<vmem>>, vector<128x128xf32>,
    return
  }
  func.func @transform_0(%arg0: i32) -> (i32, i32) {
    %c0_i32 = arith.constant 0 : i32
    %c0_i32_0 = arith.constant 0 : i32
    return %arg0, %c0_i32 : i32, i32
  }
  func.func @transform_1(%arg0: i32) -> (i32, i32) {
    %c0_i32 = arith.constant 0 : i32
    %c0_i32_0 = arith.constant 0 : i32
    %c0_i32_1 = arith.constant 0 : i32
    return %c0_i32, %c0_i32_0 : i32, i32
  }
  func.func @transform_2(%arg0: i32) -> (i32, i32) {
    %c0_i32 = arith.constant 0 : i32
    %c0_i32_0 = arith.constant 0 : i32
    %c0_i32_1 = arith.constant 0 : i32
    return %c0_i32, %c0_i32_0 : i32, i32
  }
  func.func @transform_3(%arg0: i32) -> (i32, i32) {
    %c0_i32 = arith.constant 0 : i32
    %c0_i32_0 = arith.constant 0 : i32
    return %arg0, %c0_i32 : i32, i32
  }
}

module attributes {stable_mosaic.version = 11 : i64} {
  func.func @_conv_stats_kernel(%arg0: i32, %arg1: memref<32x256xf32, #tpu.memory_space<vmem>>, %arg2: memref<256x128xf32, #tpu.memory_space<vmem>>, %arg3: memref<32x128xf32, #tpu.memory_space<vmem>>, %arg4: memref<1x2x128xf32, #tpu.memory_space<vmem>>) attributes {dimension_semantics = [#tpu.dimension_semantics<parallel>], iteration_bounds = array<i64: 1>, scalar_prefetch = 0 : i64, scratch_operands = 0 : i64, tpu.core_type = #tpu.core_type<tc>, window_params = [{transform_indices = @transform_0, window_bounds = array<i64: 32, 256>}, {pipeline_mode = #tpu.pipeline_mode<synchronous>, transform_indices = @transform_1, window_bounds = array<i64: 256, 128>}, {transform_indices = @transform_2, window_bounds = array<i64: 32, 128>}, {transform_indices = @transform_3, window_bounds = array<i64: 1, 2, 128>}]} {
    %c0 = arith.constant 0 : index
    %c0_0 = arith.constant 0 : index
    %0 = vector.load %arg1[%c0, %c0_0] : memref<32x256xf32, #tpu.memory_space<vmem>>, vector<32x256xf32>
    %c0_1 = arith.constant 0 : index
    %c0_2 = arith.constant 0 : index
    %1 = vector.load %arg2[%c0_1, %c0_2] : memref<256x128xf32, #tpu.memory_space<vmem>>, vector<256x128xf32>
    %cst = arith.constant dense<0.000000e+00> : vector<32x128xf32>
    %2 = tpu.matmul %0, %1, %cst {dimension_numbers = #tpu.dot_dimension_numbers<[1], [0], [0], [1], [0, 0, 1, 1], [], []>} : vector<32x256xf32>, vector<256x128xf32>, vector<32x128xf32> -> vector<32x128xf32>
    %c0_3 = arith.constant 0 : index
    %c0_4 = arith.constant 0 : index
    %3 = vector.load %arg3[%c0_3, %c0_4] : memref<32x128xf32, #tpu.memory_space<vmem>>, vector<32x128xf32>
    tpu.vector_store %arg3[%c0_3, %c0_4], %2 {strides = array<i32>} : memref<32x128xf32, #tpu.memory_space<vmem>>, vector<32x128xf32>,
    %cst_5 = arith.constant dense<0.000000e+00> : vector<128xf32>
    %4 = vector.multi_reduction <add>, %2, %cst_5 [0] : vector<32x128xf32> to vector<128xf32>
    %5 = vector.shape_cast %4 : vector<128xf32> to vector<1x128xf32>
    %c0_6 = arith.constant 0 : index
    %c0_7 = arith.constant 0 : index
    %c0_8 = arith.constant 0 : index
    %6 = vector.load %arg4[%c0_6, %c0_7, %c0_8] : memref<1x2x128xf32, #tpu.memory_space<vmem>>, vector<1x1x128xf32>
    %7 = vector.shape_cast %6 : vector<1x1x128xf32> to vector<1x128xf32>
    %8 = vector.shape_cast %5 : vector<1x128xf32> to vector<1x1x128xf32>
    tpu.vector_store %arg4[%c0_6, %c0_7, %c0_8], %8 {strides = array<i32>} : memref<1x2x128xf32, #tpu.memory_space<vmem>>, vector<1x1x128xf32>,
    %9 = arith.mulf %2, %2 : vector<32x128xf32>
    %cst_9 = arith.constant dense<0.000000e+00> : vector<128xf32>
    %10 = vector.multi_reduction <add>, %9, %cst_9 [0] : vector<32x128xf32> to vector<128xf32>
    %11 = vector.shape_cast %10 : vector<128xf32> to vector<1x128xf32>
    %c0_10 = arith.constant 0 : index
    %c1 = arith.constant 1 : index
    %c0_11 = arith.constant 0 : index
    %12 = vector.load %arg4[%c0_10, %c1, %c0_11] : memref<1x2x128xf32, #tpu.memory_space<vmem>>, vector<1x1x128xf32>
    %13 = vector.shape_cast %12 : vector<1x1x128xf32> to vector<1x128xf32>
    %14 = vector.shape_cast %11 : vector<1x128xf32> to vector<1x1x128xf32>
    tpu.vector_store %arg4[%c0_10, %c1, %c0_11], %14 {strides = array<i32>} : memref<1x2x128xf32, #tpu.memory_space<vmem>>, vector<1x1x128xf32>,
    return
  }
  func.func @transform_0(%arg0: i32) -> (i32, i32) {
    %c0_i32 = arith.constant 0 : i32
    %c0_i32_0 = arith.constant 0 : i32
    return %arg0, %c0_i32 : i32, i32
  }
  func.func @transform_1(%arg0: i32) -> (i32, i32) {
    %c0_i32 = arith.constant 0 : i32
    %c0_i32_0 = arith.constant 0 : i32
    %c0_i32_1 = arith.constant 0 : i32
    return %c0_i32, %c0_i32_0 : i32, i32
  }
  func.func @transform_2(%arg0: i32) -> (i32, i32) {
    %c0_i32 = arith.constant 0 : i32
    %c0_i32_0 = arith.constant 0 : i32
    return %arg0, %c0_i32 : i32, i32
  }
  func.func @transform_3(%arg0: i32) -> (i32, i32, i32) {
    %c0_i32 = arith.constant 0 : i32
    %c0_i32_0 = arith.constant 0 : i32
    %c0_i32_1 = arith.constant 0 : i32
    return %arg0, %c0_i32, %c0_i32_0 : i32, i32, i32
  }
}

module attributes {stable_mosaic.version = 11 : i64} {
  func.func @_bn_act_kernel(%arg0: i32, %arg1: memref<32x128xf32, #tpu.memory_space<vmem>>, %arg2: memref<1x128xf32, #tpu.memory_space<vmem>>, %arg3: memref<1x128xf32, #tpu.memory_space<vmem>>, %arg4: memref<32x128xf32, #tpu.memory_space<vmem>>) attributes {dimension_semantics = [#tpu.dimension_semantics<parallel>], iteration_bounds = array<i64: 1>, scalar_prefetch = 0 : i64, scratch_operands = 0 : i64, tpu.core_type = #tpu.core_type<tc>, window_params = [{transform_indices = @transform_0, window_bounds = array<i64: 32, 128>}, {pipeline_mode = #tpu.pipeline_mode<synchronous>, transform_indices = @transform_1, window_bounds = array<i64: 1, 128>}, {pipeline_mode = #tpu.pipeline_mode<synchronous>, transform_indices = @transform_2, window_bounds = array<i64: 1, 128>}, {transform_indices = @transform_3, window_bounds = array<i64: 32, 128>}]} {
    %c0 = arith.constant 0 : index
    %c0_0 = arith.constant 0 : index
    %0 = vector.load %arg1[%c0, %c0_0] : memref<32x128xf32, #tpu.memory_space<vmem>>, vector<32x128xf32>
    %c0_1 = arith.constant 0 : index
    %c0_2 = arith.constant 0 : index
    %1 = vector.load %arg2[%c0_1, %c0_2] : memref<1x128xf32, #tpu.memory_space<vmem>>, vector<1x128xf32>
    %2 = vector.broadcast %1 : vector<1x128xf32> to vector<32x128xf32>
    %3 = arith.mulf %0, %2 : vector<32x128xf32>
    %c0_3 = arith.constant 0 : index
    %c0_4 = arith.constant 0 : index
    %4 = vector.load %arg3[%c0_3, %c0_4] : memref<1x128xf32, #tpu.memory_space<vmem>>, vector<1x128xf32>
    %5 = vector.broadcast %4 : vector<1x128xf32> to vector<32x128xf32>
    %6 = arith.addf %3, %5 : vector<32x128xf32>
    %c0_5 = arith.constant 0 : index
    %c0_6 = arith.constant 0 : index
    %7 = vector.load %arg4[%c0_5, %c0_6] : memref<32x128xf32, #tpu.memory_space<vmem>>, vector<32x128xf32>
    tpu.vector_store %arg4[%c0_5, %c0_6], %6 {strides = array<i32>} : memref<32x128xf32, #tpu.memory_space<vmem>>, vector<32x128xf32>,
    return
  }
  func.func @transform_0(%arg0: i32) -> (i32, i32) {
    %c0_i32 = arith.constant 0 : i32
    %c0_i32_0 = arith.constant 0 : i32
    return %arg0, %c0_i32 : i32, i32
  }
  func.func @transform_1(%arg0: i32) -> (i32, i32) {
    %c0_i32 = arith.constant 0 : i32
    %c0_i32_0 = arith.constant 0 : i32
    %c0_i32_1 = arith.constant 0 : i32
    return %c0_i32, %c0_i32_0 : i32, i32
  }
  func.func @transform_2(%arg0: i32) -> (i32, i32) {
    %c0_i32 = arith.constant 0 : i32
    %c0_i32_0 = arith.constant 0 : i32
    %c0_i32_1 = arith.constant 0 : i32
    return %c0_i32, %c0_i32_0 : i32, i32
  }
  func.func @transform_3(%arg0: i32) -> (i32, i32) {
    %c0_i32 = arith.constant 0 : i32
    %c0_i32_0 = arith.constant 0 : i32
    return %arg0, %c0_i32 : i32, i32
  }
}

</mosaic_0001>

<bundles_post_ra>
// kernel: stem_layer_forward.4
= control target key start
LH: loop header
LB: loop body
LE: loop exit
PB: predicated region body
PF: predicated region fallthrough
CT: control target
= control target key end

     0   :  { %s580_s1 = inlined_call_operand.vmem [shape: f32[128,128], index: 1, kind: input, shape index: {}]   ;;  %s581_s0 = inlined_call_operand.vmem [shape: f32[128,128], index: 0, kind: input, shape index: {}]   ;;  %s582_s2 = inlined_call_operand.vmem [shape: f32[128,128], index: 2, kind: output, shape index: {0}]   ;;  %s583_s3 = inlined_call_operand.vmem [shape: f32[1,2,128], index: 3, kind: output, shape index: {1}]  }
   0x1   :  { %v29_v0 = vld [vmem:[%s580_s1] sm:$0xff]  ;;  %v30_v1 = vld [vmem:[%s580_s1 + $0x8] sm:$0xff]  ;;  %v31_v2 = vld [vmem:[%s580_s1 + $0x10] sm:$0xff] }
   0x2   :  { %v362_v3 = vpack.c.bf16 %v30_v1, %v29_v0  ;;  %v32_v4 = vld [vmem:[%s580_s1 + $0x18] sm:$0xff]  ;;  %v33_v6 = vld [vmem:[%s580_s1 + $0x20] sm:$0xff]  ;;  %v34_v7 = vld [vmem:[%s580_s1 + $0x28] sm:$0xff] }
   0x3   :  { %v366_v5 = vpack.c.bf16 %v32_v4, %v31_v2  ;;  %v370_v8 = vpack.c.bf16 %v34_v7, %v33_v6  ;;  %v13_v9 = vld [vmem:[%s581_s0] sm:$0xff]  ;;  %v35_v10 = vld [vmem:[%s580_s1 + $0x30] sm:$0xff]  ;;  %v36_v11 = vld [vmem:[%s580_s1 + $0x38] sm:$0xff] }
   0x4   :  { %363 = vmatprep.subr.bf16.mxu0 %v362_v3  ;;  %394 = vmatprep.subr.bf16.mxu1 %v362_v3  ;;  %v21_v12 = vld [vmem:[%s581_s0 + $0x40] sm:$0xff]  ;;  %v374_v13 = vpack.c.bf16 %v36_v11, %v35_v10  ;;  %v38_v15 = vld [vmem:[%s580_s1 + $0x48] sm:$0xff]  ;;  %v39_v17 = vld [vmem:[%s580_s1 + $0x50] sm:$0xff] }
   0x5   :  { %365 = vmatpush3.bf16.msra.mxu0 %v362_v3  ;;  %402 = vmatpush3.bf16.msra.mxu1 %v362_v3  ;;  %v37_v14 = vld [vmem:[%s580_s1 + $0x40] sm:$0xff]  ;;  %v40_v18 = vld [vmem:[%s580_s1 + $0x58] sm:$0xff]  ;;  %v42_v21 = vld [vmem:[%s580_s1 + $0x68] sm:$0xff] }
   0x6   :  { %367 = vmatprep.subr.bf16.mxu0 %v366_v5  ;;  %395 = vmatprep.subr.bf16.mxu1 %v366_v5  ;;  %v378_v16 = vpack.c.bf16 %v38_v15, %v37_v14  ;;  %v382_v19 = vpack.c.bf16 %v40_v18, %v39_v17  ;;  %v41_v20 = vld [vmem:[%s580_s1 + $0x60] sm:$0xff]  ;;  %v43_v23 = vld [vmem:[%s580_s1 + $0x70] sm:$0xff]  ;;  %v44_v24 = vld [vmem:[%s580_s1 + $0x78] sm:$0xff] }
   0x7   :  { %338 = vmatprep.mubr.f32.mxu0 %v13_v9  ;;  %350 = vmatprep.mubr.f32.mxu1 %v21_v12  ;;  %v386_v22 = vpack.c.bf16 %v42_v21, %v41_v20  ;;  %v390_v25 = vpack.c.bf16 %v44_v24, %v43_v23  ;;  %v14_v26 = vld [vmem:[%s581_s0 + $0x8] sm:$0xff]  ;;  %v15_v28 = vld [vmem:[%s581_s0 + $0x10] sm:$0xff]  ;;  %v16_v30 = vld [vmem:[%s581_s0 + $0x18] sm:$0xff] }
   0x8   :  { %v22_v27 = vld [vmem:[%s581_s0 + $0x48] sm:$0xff]  ;;  %v23_v29 = vld [vmem:[%s581_s0 + $0x50] sm:$0xff]  ;;  %v24_v31 = vld [vmem:[%s581_s0 + $0x58] sm:$0xff] }
   0x9   :  { %369 = vmatpush3.bf16.msra.mxu0 %v366_v5  ;;  %403 = vmatpush3.bf16.msra.mxu1 %v366_v5  ;;  %v17_v32 = vld [vmem:[%s581_s0 + $0x20] sm:$0xff]  ;;  %v18_v34 = vld [vmem:[%s581_s0 + $0x28] sm:$0xff]  ;;  %v19_v36 = vld [vmem:[%s581_s0 + $0x30] sm:$0xff] }
   0xa   :  { %371 = vmatprep.subr.bf16.mxu0 %v370_v8  ;;  %396 = vmatprep.subr.bf16.mxu1 %v370_v8  ;;  %v25_v33 = vld [vmem:[%s581_s0 + $0x60] sm:$0xff]  ;;  %v26_v35 = vld [vmem:[%s581_s0 + $0x68] sm:$0xff]  ;;  %v27_v37 = vld [vmem:[%s581_s0 + $0x70] sm:$0xff] }
   0xb   :  { %v20_v38 = vld [vmem:[%s581_s0 + $0x38] sm:$0xff] }
   0xc   :  { %v28_v39 = vld [vmem:[%s581_s0 + $0x78] sm:$0xff] }
   0xd   :  { %373 = vmatpush3.bf16.msra.mxu0 %v370_v8  ;;  %404 = vmatpush3.bf16.msra.mxu1 %v370_v8 }
   0xe   :  { %375 = vmatprep.subr.bf16.mxu0 %v374_v13  ;;  %397 = vmatprep.subr.bf16.mxu1 %v374_v13 }
  0x11   :  { %377 = vmatpush3.bf16.msra.mxu0 %v374_v13  ;;  %405 = vmatpush3.bf16.msra.mxu1 %v374_v13 }
  0x12   :  { %379 = vmatprep.subr.bf16.mxu0 %v378_v16  ;;  %398 = vmatprep.subr.bf16.mxu1 %v378_v16 }
  0x15   :  { %381 = vmatpush3.bf16.msra.mxu0 %v378_v16  ;;  %406 = vmatpush3.bf16.msra.mxu1 %v378_v16 }
  0x16   :  { %383 = vmatprep.subr.bf16.mxu0 %v382_v19  ;;  %399 = vmatprep.subr.bf16.mxu1 %v382_v19 }
  0x19   :  { %385 = vmatpush3.bf16.msra.mxu0 %v382_v19  ;;  %407 = vmatpush3.bf16.msra.mxu1 %v382_v19 }
  0x1a   :  { %387 = vmatprep.subr.bf16.mxu0 %v386_v22  ;;  %400 = vmatprep.subr.bf16.mxu1 %v386_v22 }
  0x1d   :  { %389 = vmatpush3.bf16.msra.mxu0 %v386_v22  ;;  %408 = vmatpush3.bf16.msra.mxu1 %v386_v22 }
  0x1e   :  { %391 = vmatprep.subr.bf16.mxu0 %v390_v25  ;;  %401 = vmatprep.subr.bf16.mxu1 %v390_v25 }
  0x21   :  { %393 = vmatpush3.bf16.msra.mxu0 %v390_v25  ;;  %409 = vmatpush3.bf16.msra.mxu1 %v390_v25 }
  0x24   :  { %339 = vmatmul.mubr.f32.vlgmr.msra.gmra.mrb[0].mxu0 %v14_v26  ;;  %351 = vmatmul.mubr.f32.vlgmr.msra.gmra.mrb[0].mxu1 %v22_v27 }
  0x25   :  { %341 = vmatprep.mubr.f32.mxu0 %v15_v28  ;;  %353 = vmatprep.mubr.f32.mxu1 %v23_v29 }
  0x28   :  { %342 = vmatmul.mubr.f32.gmra.mrb[2].mxu0 %v16_v30  ;;  %354 = vmatmul.mubr.f32.gmra.mrb[2].mxu1 %v24_v31 }
  0x29   :  { %344 = vmatprep.mubr.f32.mxu0 %v17_v32  ;;  %356 = vmatprep.mubr.f32.mxu1 %v25_v33 }
  0x2c   :  { %345 = vmatmul.mubr.f32.gmra.mrb[4].mxu0 %v18_v34  ;;  %357 = vmatmul.mubr.f32.gmra.mrb[4].mxu1 %v26_v35 }
  0x2d   :  { %347 = vmatprep.mubr.f32.mxu0 %v19_v36  ;;  %359 = vmatprep.mubr.f32.mxu1 %v27_v37 }
  0x30   :  { %348 = vmatmul.mubr.f32.gmra.mrb[6].mxu0 %v20_v38  ;;  %360 = vmatmul.mubr.f32.gmra.mrb[6].mxu1 %v28_v39 }
  0xf7   :  { %v340_v40 = vpop.f32.mrb[0].mxu0  ;;  %v352_v41 = vpop.f32.mrb[0].mxu1 }
  0xf8   :  { %191 = vst [vmem:[%s582_s2 + $0x8] sm:$0xff] %v340_v40  ;;  %v229_v42 = vmul.f32 %v340_v40, %v340_v40  ;;  %v111_v43 = vpop.f32.mrb[1].mxu0  ;;  %199 = vst [vmem:[%s582_s2 + $0x48] sm:$0xff] %v352_v41  ;;  %v151_v44 = vpop.f32.mrb[1].mxu1  ;;  %v237_v16 = vmul.f32 %v352_v41, %v352_v41 }
  0xf9   :  { %190 = vst [vmem:[%s582_s2] sm:$0xff] %v111_v43  ;;  %v206_v45 = vadd.f32 %v340_v40, %v111_v43  ;;  %v228_v46 = vmul.f32 %v111_v43, %v111_v43  ;;  %198 = vst [vmem:[%s582_s2 + $0x40] sm:$0xff] %v151_v44  ;;  %v236_v13 = vmul.f32 %v151_v44, %v151_v44 }
  0xfb   :  { %v244_v47 = vadd.f32 %v229_v42, %v228_v46  ;;  %v343_v48 = vpop.f32.mrb[2].mxu0  ;;  %v355_v49 = vpop.f32.mrb[2].mxu1 }
  0xfc   :  { %193 = vst [vmem:[%s582_s2 + $0x18] sm:$0xff] %v343_v48  ;;  %v121_v50 = vpop.f32.mrb[3].mxu0  ;;  %201 = vst [vmem:[%s582_s2 + $0x58] sm:$0xff] %v355_v49  ;;  %v161_v51 = vpop.f32.mrb[3].mxu1  ;;  %v231_v54 = vmul.f32 %v343_v48, %v343_v48  ;;  %v239_v22 = vmul.f32 %v355_v49, %v355_v49 }
  0xfd   :  { %192 = vst [vmem:[%s582_s2 + $0x10] sm:$0xff] %v121_v50  ;;  %v207_v52 = vadd.f32 %v206_v45, %v121_v50  ;;  %v230_v53 = vmul.f32 %v121_v50, %v121_v50  ;;  %200 = vst [vmem:[%s582_s2 + $0x50] sm:$0xff] %v161_v51  ;;  %v238_v19 = vmul.f32 %v161_v51, %v161_v51 }
  0xff   :  { %v245_v55 = vadd.f32 %v244_v47, %v230_v53  ;;  %v346_v56 = vpop.f32.mrb[4].mxu0  ;;  %v208_v57 = vadd.f32 %v343_v48, %v207_v52  ;;  %v358_v58 = vpop.f32.mrb[4].mxu1 }
 0x100   :  { %195 = vst [vmem:[%s582_s2 + $0x28] sm:$0xff] %v346_v56  ;;  %v131_v59 = vpop.f32.mrb[5].mxu0  ;;  %203 = vst [vmem:[%s582_s2 + $0x68] sm:$0xff] %v358_v58  ;;  %v171_v60 = vpop.f32.mrb[5].mxu1  ;;  %v233_v0 = vmul.f32 %v346_v56, %v346_v56  ;;  %v241_v28 = vmul.f32 %v358_v58, %v358_v58 }
 0x101   :  { %194 = vst [vmem:[%s582_s2 + $0x20] sm:$0xff] %v131_v59  ;;  %v209_v61 = vadd.f32 %v208_v57, %v131_v59  ;;  %v232_v62 = vmul.f32 %v131_v59, %v131_v59  ;;  %v246_v63 = vadd.f32 %v245_v55, %v231_v54  ;;  %202 = vst [vmem:[%s582_s2 + $0x60] sm:$0xff] %v171_v60 }
 0x102   :  { %v240_v25 = vmul.f32 %v171_v60, %v171_v60 }
 0x103   :  { %v247_v1 = vadd.f32 %v246_v63, %v232_v62  ;;  %v349_v2 = vpop.f32.mrb[6].mxu0  ;;  %v210_v3 = vadd.f32 %v346_v56, %v209_v61  ;;  %v361_v4 = vpop.f32.mrb[6].mxu1 }
 0x104   :  { %197 = vst [vmem:[%s582_s2 + $0x38] sm:$0xff] %v349_v2  ;;  %v141_v5 = vpop.f32.mrb[7].mxu0  ;;  %205 = vst [vmem:[%s582_s2 + $0x78] sm:$0xff] %v361_v4  ;;  %v181_v6 = vpop.f32.mrb[7].mxu1  ;;  %v235_v10 = vmul.f32 %v349_v2, %v349_v2  ;;  %v243_v34 = vmul.f32 %v361_v4, %v361_v4 }
 0x105   :  { %196 = vst [vmem:[%s582_s2 + $0x30] sm:$0xff] %v141_v5  ;;  %v211_v7 = vadd.f32 %v210_v3, %v141_v5  ;;  %v234_v8 = vmul.f32 %v141_v5, %v141_v5  ;;  %v248_v9 = vadd.f32 %v247_v1, %v233_v0  ;;  %204 = vst [vmem:[%s582_s2 + $0x70] sm:$0xff] %v181_v6 }
 0x106   :  { %v242_v31 = vmul.f32 %v181_v6, %v181_v6 }
 0x107   :  { %v212_v11 = vadd.f32 %v349_v2, %v211_v7  ;;  %v249_v12 = vadd.f32 %v248_v9, %v234_v8 }
 0x109   :  { %v250_v14 = vadd.f32 %v249_v12, %v235_v10  ;;  %v213_v15 = vadd.f32 %v212_v11, %v151_v44 }
 0x10b   :  { %v251_v17 = vadd.f32 %v250_v14, %v236_v13  ;;  %v214_v18 = vadd.f32 %v352_v41, %v213_v15 }
 0x10d   :  { %v215_v20 = vadd.f32 %v214_v18, %v161_v51  ;;  %v252_v21 = vadd.f32 %v251_v17, %v237_v16 }
 0x10f   :  { %v253_v23 = vadd.f32 %v252_v21, %v238_v19  ;;  %v216_v24 = vadd.f32 %v355_v49, %v215_v20 }
 0x111   :  { %v217_v26 = vadd.f32 %v216_v24, %v171_v60  ;;  %v254_v27 = vadd.f32 %v253_v23, %v239_v22 }
 0x113   :  { %v255_v29 = vadd.f32 %v254_v27, %v240_v25  ;;  %v218_v30 = vadd.f32 %v358_v58, %v217_v26 }
 0x115   :  { %v219_v32 = vadd.f32 %v218_v30, %v181_v6  ;;  %v256_v33 = vadd.f32 %v255_v29, %v241_v28 }
 0x117   :  { %v220_v35 = vadd.f32 %v361_v4, %v219_v32  ;;  %v257_v36 = vadd.f32 %v256_v33, %v242_v31 }
 0x119   :  { %v221_v37 = vrot.slane %v220_v35, 4  ;;  %v258_v38 = vadd.f32 %v257_v36, %v243_v34 }
 0x11b   :  { %v222_v39 = vadd.f32 %v221_v37, %v220_v35  ;;  %v259_v40 = vrot.slane %v258_v38, 4 }
 0x11d   :  { %v223_v41 = vrot.slane %v222_v39, 2  ;;  %v260_v42 = vadd.f32 %v259_v40, %v258_v38 }
 0x11f   :  { %v224_v43 = vadd.f32 %v223_v41, %v222_v39  ;;  %v261_v44 = vrot.slane %v260_v42, 2 }
 0x121   :  { %v225_v45 = vrot.slane %v224_v43, 1  ;;  %v262_v46 = vadd.f32 %v261_v44, %v260_v42 }
 0x123   :  { %v226_v47 = vadd.f32 %v225_v45, %v224_v43  ;;  %v263_v48 = vrot.slane %v262_v46, 1 }
 0x125   :  { %227 = vst [vmem:[%s583_s3] sm:$0x1] %v226_v47  ;;  %v264_v49 = vadd.f32 %v263_v48, %v262_v46 }
 0x127   :  { %265 = vst [vmem:[%s583_s3 + $0x1] sm:$0x1] %v264_v49 }

// kernel: stem_layer_forward.5
= control target key start
LH: loop header
LB: loop body
LE: loop exit
PB: predicated region body
PF: predicated region fallthrough
CT: control target
= control target key end

     0   :  { %s404_s0 = inlined_call_operand.vmem [shape: f32[128,128], index: 0, kind: input, shape index: {}]   ;;  %s405_s1 = inlined_call_operand.vmem [shape: f32[1,128], index: 1, kind: input, shape index: {}]   ;;  %s406_s2 = inlined_call_operand.vmem [shape: f32[1,128], index: 2, kind: input, shape index: {}]   ;;  %s407_s3 = inlined_call_operand.vmem [shape: f32[128,128], index: 3, kind: output, shape index: {}]  }
   0x1   :  { %v14_v0 = vld [vmem:[%s404_s0] sm:$0xff]  ;;  %v15_v4 = vld [vmem:[%s404_s0 + $0x8] sm:$0xff]  ;;  %v16_v5 = vld [vmem:[%s404_s0 + $0x10] sm:$0xff] }
   0x2   :  { %v236_v1 = vld [vmem:[%s405_s1] ss:$0 sm:$0xff]  ;;  %v17_v6 = vld [vmem:[%s404_s0 + $0x18] sm:$0xff]  ;;  %v19_v11 = vld [vmem:[%s404_s0 + $0x28] sm:$0xff] }
   0x3   :  { %v241_v2 = vld [vmem:[%s406_s2] ss:$0 sm:$0xff]  ;;  %v37_v3 = vmul.f32 %v236_v1, %v14_v0  ;;  %v38_v7 = vmul.f32 %v236_v1, %v15_v4  ;;  %v39_v8 = vmul.f32 %v236_v1, %v16_v5  ;;  %v40_v9 = vmul.f32 %v236_v1, %v17_v6  ;;  %v20_v12 = vld [vmem:[%s404_s0 + $0x30] sm:$0xff]  ;;  %v21_v16 = vld [vmem:[%s404_s0 + $0x38] sm:$0xff] }
   0x4   :  { %v18_v10 = vld [vmem:[%s404_s0 + $0x20] sm:$0xff]  ;;  %v42_v15 = vmul.f32 %v236_v1, %v19_v11  ;;  %v43_v20 = vmul.f32 %v236_v1, %v20_v12  ;;  %v44_v24 = vmul.f32 %v236_v1, %v21_v16  ;;  %v23_v29 = vld [vmem:[%s404_s0 + $0x48] sm:$0xff]  ;;  %v24_v30 = vld [vmem:[%s404_s0 + $0x50] sm:$0xff] }
   0x5   :  { %v60_v13 = vadd.f32 %v241_v2, %v37_v3  ;;  %v41_v14 = vmul.f32 %v236_v1, %v18_v10  ;;  %v61_v17 = vadd.f32 %v241_v2, %v38_v7  ;;  %v62_v18 = vadd.f32 %v241_v2, %v39_v8  ;;  %v22_v27 = vld [vmem:[%s404_s0 + $0x40] sm:$0xff]  ;;  %v25_v31 = vld [vmem:[%s404_s0 + $0x58] sm:$0xff]  ;;  %v27_v48 = vld [vmem:[%s404_s0 + $0x68] sm:$0xff] }
   0x6   :  { %v63_v19 = vadd.f32 %v241_v2, %v40_v9  ;;  %v277_v23 = vadd.f32 %v241_v2, %v42_v15  ;;  %v66_v34 = vadd.f32 %v241_v2, %v43_v20  ;;  %v295_v35 = vadd.f32 %v241_v2, %v44_v24  ;;  %v26_v40 = vld [vmem:[%s404_s0 + $0x60] sm:$0xff]  ;;  %v28_v51 = vld [vmem:[%s404_s0 + $0x70] sm:$0xff]  ;;  %v29_v52 = vld [vmem:[%s404_s0 + $0x78] sm:$0xff] }
   0x7   :  { %v92_v21 = vmul.f32 0.70710677, %v60_v13  ;;  %v64_v22 = vadd.f32 %v241_v2, %v41_v14  ;;  %v93_v25 = vmul.f32 0.70710677, %v61_v17  ;;  %v94_v26 = vmul.f32 0.70710677, %v62_v18 }
   0x8   :  { %v95_v28 = vmul.f32 0.70710677, %v63_v19  ;;  %v97_v33 = vmul.f32 0.70710677, %v277_v23  ;;  %v45_v36 = vmul.f32 %v236_v1, %v22_v27  ;;  %v46_v37 = vmul.f32 %v236_v1, %v23_v29 }
   0x9   :  { %178 = verf.f32 %v92_v21  ;;  %v96_v32 = vmul.f32 0.70710677, %v64_v22  ;;  %v47_v38 = vmul.f32 %v236_v1, %v24_v30  ;;  %v48_v39 = vmul.f32 %v236_v1, %v25_v31 }
   0xa   :  { %180 = verf.f32 %v93_v25  ;;  %v98_v41 = vmul.f32 0.70710677, %v66_v34  ;;  %v99_v42 = vmul.f32 0.70710677, %v295_v35  ;;  %v306_v43 = vadd.f32 %v241_v2, %v45_v36 }
   0xb   :  { %182 = verf.f32 %v94_v26  ;;  %v309_v44 = vadd.f32 %v241_v2, %v46_v37  ;;  %v312_v45 = vadd.f32 %v241_v2, %v47_v38  ;;  %v315_v46 = vadd.f32 %v241_v2, %v48_v39 }
   0xc   :  { %184 = verf.f32 %v95_v28  ;;  %v49_v47 = vmul.f32 %v236_v1, %v26_v40  ;;  %v76_v49 = vmul.f32 0.5, %v60_v13  ;;  %v100_v50 = vmul.f32 0.70710677, %v306_v43 }
   0xd   :  { %186 = verf.f32 %v96_v32  ;;  %v77_v53 = vmul.f32 0.5, %v61_v17  ;;  %v78_v54 = vmul.f32 0.5, %v62_v18  ;;  %v101_v55 = vmul.f32 0.70710677, %v309_v44 }
   0xe   :  { %188 = verf.f32 %v97_v33  ;;  %v102_v56 = vmul.f32 0.70710677, %v312_v45  ;;  %v103_v57 = vmul.f32 0.70710677, %v315_v46  ;;  %v332_v58 = vadd.f32 %v241_v2, %v49_v47 }
   0xf   :  { %190 = verf.f32 %v98_v41  ;;  %v50_v59 = vmul.f32 %v236_v1, %v27_v48  ;;  %v79_v61 = vmul.f32 0.5, %v63_v19  ;;  %v51_v62 = vmul.f32 %v236_v1, %v28_v51 }
  0x10   :  { %192 = verf.f32 %v99_v42  ;;  %v52_v63 = vmul.f32 %v236_v1, %v29_v52  ;;  %v80_v4 = vmul.f32 0.5, %v64_v22  ;;  %v104_v5 = vmul.f32 0.70710677, %v332_v58 }
  0x11   :  { %194 = verf.f32 %v100_v50  ;;  %v73_v8 = vadd.f32 %v241_v2, %v50_v59  ;;  %v340_v9 = vadd.f32 %v241_v2, %v51_v62  ;;  %v81_v16 = vmul.f32 0.5, %v277_v23 }
  0x12   :  { %196 = verf.f32 %v101_v55  ;;  %v343_v1 = vadd.f32 %v241_v2, %v52_v63  ;;  %v82_v21 = vmul.f32 0.5, %v66_v34  ;;  %v83_v23 = vmul.f32 0.5, %v295_v35 }
  0x13   :  { %v179_v60 = vpop.eup %178  ;;  %198 = verf.f32 %v102_v56  ;;  %v105_v17 = vmul.f32 0.70710677, %v73_v8  ;;  %v106_v22 = vmul.f32 0.70710677, %v340_v9  ;;  %v84_v32 = vmul.f32 0.5, %v306_v43 }
  0x14   :  { %v181_v0 = vpop.eup %180  ;;  %v124_v3 = vadd.f32 1.0, %v179_v60  ;;  %200 = verf.f32 %v103_v57  ;;  %v107_v29 = vmul.f32 0.70710677, %v343_v1  ;;  %v85_v35 = vmul.f32 0.5, %v309_v44 }
  0x15   :  { %v183_v6 = vpop.eup %182  ;;  %v125_v7 = vadd.f32 1.0, %v181_v0  ;;  %202 = verf.f32 %v104_v5  ;;  %v86_v39 = vmul.f32 0.5, %v312_v45  ;;  %v87_v42 = vmul.f32 0.5, %v315_v46 }
  0x16   :  { %v185_v10 = vpop.eup %184  ;;  %v140_v11 = vmul.f32 %v124_v3, %v76_v49  ;;  %v126_v12 = vadd.f32 1.0, %v183_v6  ;;  %204 = verf.f32 %v105_v17  ;;  %v88_v48 = vmul.f32 0.5, %v332_v58 }
  0x17   :  { %v187_v13 = vpop.eup %186  ;;  %v141_v14 = vmul.f32 %v125_v7, %v77_v53  ;;  %v127_v15 = vadd.f32 1.0, %v185_v10  ;;  %206 = verf.f32 %v106_v22  ;;  %v89_v53 = vmul.f32 0.5, %v73_v8 }
  0x18   :  { %v189_v18 = vpop.eup %188  ;;  %156 = vst [vmem:[%s407_s3] sm:$0xff] %v140_v11  ;;  %v142_v19 = vmul.f32 %v126_v12, %v78_v54  ;;  %v128_v20 = vadd.f32 1.0, %v187_v13  ;;  %208 = verf.f32 %v107_v29  ;;  %v90_v56 = vmul.f32 0.5, %v340_v9 }
  0x19   :  { %v191_v24 = vpop.eup %190  ;;  %157 = vst [vmem:[%s407_s3 + $0x8] sm:$0xff] %v141_v14  ;;  %v143_v2 = vmul.f32 %v127_v15, %v79_v61  ;;  %v129_v25 = vadd.f32 1.0, %v189_v18  ;;  %v91_v60 = vmul.f32 0.5, %v343_v1 }
  0x1a   :  { %v193_v26 = vpop.eup %192  ;;  %158 = vst [vmem:[%s407_s3 + $0x10] sm:$0xff] %v142_v19  ;;  %v144_v27 = vmul.f32 %v128_v20, %v80_v4  ;;  %v130_v28 = vadd.f32 1.0, %v191_v24 }
  0x1b   :  { %159 = vst [vmem:[%s407_s3 + $0x18] sm:$0xff] %v143_v2  ;;  %v145_v30 = vmul.f32 %v129_v25, %v81_v16  ;;  %v131_v31 = vadd.f32 1.0, %v193_v26  ;;  %v195_v33 = vpop.eup %194 }
  0x1c   :  { %160 = vst [vmem:[%s407_s3 + $0x20] sm:$0xff] %v144_v27  ;;  %v146_v34 = vmul.f32 %v130_v28, %v82_v21  ;;  %v197_v36 = vpop.eup %196  ;;  %v132_v38 = vadd.f32 1.0, %v195_v33 }
  0x1d   :  { %161 = vst [vmem:[%s407_s3 + $0x28] sm:$0xff] %v145_v30  ;;  %v147_v37 = vmul.f32 %v131_v31, %v83_v23  ;;  %v199_v40 = vpop.eup %198  ;;  %v133_v41 = vadd.f32 1.0, %v197_v36 }
  0x1e   :  { %162 = vst [vmem:[%s407_s3 + $0x30] sm:$0xff] %v146_v34  ;;  %v201_v43 = vpop.eup %200  ;;  %v148_v44 = vmul.f32 %v132_v38, %v84_v32  ;;  %v134_v47 = vadd.f32 1.0, %v199_v40 }
  0x1f   :  { %163 = vst [vmem:[%s407_s3 + $0x38] sm:$0xff] %v147_v37  ;;  %v203_v49 = vpop.eup %202  ;;  %v149_v50 = vmul.f32 %v133_v41, %v85_v35  ;;  %v135_v45 = vadd.f32 1.0, %v201_v43 }
  0x20   :  { %164 = vst [vmem:[%s407_s3 + $0x40] sm:$0xff] %v148_v44  ;;  %v150_v51 = vmul.f32 %v134_v47, %v86_v39  ;;  %v136_v52 = vadd.f32 1.0, %v203_v49  ;;  %v205_v54 = vpop.eup %204 }
  0x21   :  { %165 = vst [vmem:[%s407_s3 + $0x48] sm:$0xff] %v149_v50  ;;  %v151_v46 = vmul.f32 %v135_v45, %v87_v42  ;;  %v207_v57 = vpop.eup %206  ;;  %v137_v58 = vadd.f32 1.0, %v205_v54 }
  0x22   :  { %166 = vst [vmem:[%s407_s3 + $0x50] sm:$0xff] %v150_v51  ;;  %v152_v55 = vmul.f32 %v136_v52, %v88_v48  ;;  %v138_v59 = vadd.f32 1.0, %v207_v57  ;;  %v209_v61 = vpop.eup %208 }
  0x23   :  { %167 = vst [vmem:[%s407_s3 + $0x58] sm:$0xff] %v151_v46  ;;  %v153_v62 = vmul.f32 %v137_v58, %v89_v53  ;;  %v139_v0 = vadd.f32 1.0, %v209_v61 }
  0x24   :  { %168 = vst [vmem:[%s407_s3 + $0x60] sm:$0xff] %v152_v55  ;;  %v154_v63 = vmul.f32 %v138_v59, %v90_v56 }
  0x25   :  { %169 = vst [vmem:[%s407_s3 + $0x68] sm:$0xff] %v153_v62  ;;  %v155_v3 = vmul.f32 %v139_v0, %v91_v60 }
  0x26   :  { %170 = vst [vmem:[%s407_s3 + $0x70] sm:$0xff] %v154_v63 }
  0x27   :  { %171 = vst [vmem:[%s407_s3 + $0x78] sm:$0xff] %v155_v3 }

// kernel: stem_layer_forward.6
= control target key start
LH: loop header
LB: loop body
LE: loop exit
PB: predicated region body
PF: predicated region fallthrough
CT: control target
= control target key end

     0   :  { %s424_s1 = inlined_call_operand.vmem [shape: f32[256,128], index: 1, kind: input, shape index: {}]   ;;  %s425_s0 = inlined_call_operand.vmem [shape: f32[32,256], index: 0, kind: input, shape index: {}]   ;;  %s426_s2 = inlined_call_operand.vmem [shape: f32[32,128], index: 2, kind: output, shape index: {0}]   ;;  %s427_s3 = inlined_call_operand.vmem [shape: f32[1,2,128], index: 3, kind: output, shape index: {1}]  }
   0x1   :  { %v37_v0 = vld [vmem:[%s424_s1 + $0x80] sm:$0xff]  ;;  %v38_v1 = vld [vmem:[%s424_s1 + $0x88] sm:$0xff]  ;;  %v39_v5 = vld [vmem:[%s424_s1 + $0x90] sm:$0xff] }
   0x2   :  { %v21_v2 = vld [vmem:[%s424_s1] sm:$0xff]  ;;  %v218_v3 = vpack.c.bf16 %v38_v1, %v37_v0  ;;  %v22_v4 = vld [vmem:[%s424_s1 + $0x8] sm:$0xff]  ;;  %v40_v6 = vld [vmem:[%s424_s1 + $0x98] sm:$0xff] }
   0x3   :  { %v220_v7 = vpack.c.bf16 %v22_v4, %v21_v2  ;;  %v222_v8 = vpack.c.bf16 %v40_v6, %v39_v5  ;;  %v23_v9 = vld [vmem:[%s424_s1 + $0x10] sm:$0xff]  ;;  %v24_v10 = vld [vmem:[%s424_s1 + $0x18] sm:$0xff]  ;;  %v41_v11 = vld [vmem:[%s424_s1 + $0xa0] sm:$0xff] }
   0x4   :  { %219 = vmatprep.subr.bf16.mxu0 %v218_v3  ;;  %250 = vmatprep.subr.bf16.mxu1 %v218_v3  ;;  %v42_v12 = vld [vmem:[%s424_s1 + $0xa8] sm:$0xff]  ;;  %v224_v13 = vpack.c.bf16 %v24_v10, %v23_v9  ;;  %v25_v15 = vld [vmem:[%s424_s1 + $0x20] sm:$0xff]  ;;  %v43_v17 = vld [vmem:[%s424_s1 + $0xb0] sm:$0xff] }
   0x5   :  { %221 = vmatpush3.bf16.msra.mxu0 %v220_v7  ;;  %258 = vmatpush3.bf16.msra.mxu1 %v220_v7  ;;  %v226_v14 = vpack.c.bf16 %v42_v12, %v41_v11  ;;  %v26_v16 = vld [vmem:[%s424_s1 + $0x28] sm:$0xff]  ;;  %v44_v18 = vld [vmem:[%s424_s1 + $0xb8] sm:$0xff]  ;;  %v27_v21 = vld [vmem:[%s424_s1 + $0x30] sm:$0xff] }
   0x6   :  { %223 = vmatprep.subr.bf16.mxu0 %v222_v8  ;;  %251 = vmatprep.subr.bf16.mxu1 %v222_v8  ;;  %v228_v19 = vpack.c.bf16 %v26_v16, %v25_v15  ;;  %v230_v20 = vpack.c.bf16 %v44_v18, %v43_v17  ;;  %v28_v22 = vld [vmem:[%s424_s1 + $0x38] sm:$0xff]  ;;  %v45_v23 = vld [vmem:[%s424_s1 + $0xc0] sm:$0xff]  ;;  %v46_v24 = vld [vmem:[%s424_s1 + $0xc8] sm:$0xff] }
   0x7   :  { %v14_v25 = vld [vmem:[%s425_s0 + $0x8] sm:$0xff]  ;;  %v232_v27 = vpack.c.bf16 %v28_v22, %v27_v21  ;;  %v234_v28 = vpack.c.bf16 %v46_v24, %v45_v23  ;;  %v29_v29 = vld [vmem:[%s424_s1 + $0x40] sm:$0xff]  ;;  %v47_v31 = vld [vmem:[%s424_s1 + $0xd0] sm:$0xff] }
   0x8   :  { %117 = vmatprep.mubr.f32.mxu0 %v14_v25  ;;  %v18_v26 = vld [vmem:[%s425_s0 + $0x28] sm:$0xff]  ;;  %v48_v32 = vld [vmem:[%s424_s1 + $0xd8] sm:$0xff]  ;;  %v31_v35 = vld [vmem:[%s424_s1 + $0x50] sm:$0xff] }
   0x9   :  { %225 = vmatpush3.bf16.msra.mxu0 %v224_v13  ;;  %259 = vmatpush3.bf16.msra.mxu1 %v224_v13  ;;  %v30_v30 = vld [vmem:[%s424_s1 + $0x48] sm:$0xff]  ;;  %v238_v34 = vpack.c.bf16 %v48_v32, %v47_v31  ;;  %v32_v36 = vld [vmem:[%s424_s1 + $0x58] sm:$0xff]  ;;  %v49_v37 = vld [vmem:[%s424_s1 + $0xe0] sm:$0xff] }
   0xa   :  { %227 = vmatprep.subr.bf16.mxu0 %v226_v14  ;;  %252 = vmatprep.subr.bf16.mxu1 %v226_v14  ;;  %v236_v33 = vpack.c.bf16 %v30_v30, %v29_v29  ;;  %v50_v38 = vld [vmem:[%s424_s1 + $0xe8] sm:$0xff]  ;;  %v240_v39 = vpack.c.bf16 %v32_v36, %v31_v35  ;;  %v33_v41 = vld [vmem:[%s424_s1 + $0x60] sm:$0xff]  ;;  %v51_v43 = vld [vmem:[%s424_s1 + $0xf0] sm:$0xff] }
   0xb   :  { %127 = vmatprep.mubr.f32.mxu1 %v18_v26  ;;  %v242_v40 = vpack.c.bf16 %v50_v38, %v49_v37  ;;  %v34_v42 = vld [vmem:[%s424_s1 + $0x68] sm:$0xff]  ;;  %v52_v44 = vld [vmem:[%s424_s1 + $0xf8] sm:$0xff]  ;;  %v35_v47 = vld [vmem:[%s424_s1 + $0x70] sm:$0xff] }
   0xc   :  { %v244_v45 = vpack.c.bf16 %v34_v42, %v33_v41  ;;  %v246_v46 = vpack.c.bf16 %v52_v44, %v51_v43  ;;  %v36_v48 = vld [vmem:[%s424_s1 + $0x78] sm:$0xff]  ;;  %v13_v50 = vld [vmem:[%s425_s0] sm:$0xff]  ;;  %v15_v54 = vld [vmem:[%s425_s0 + $0x10] sm:$0xff] }
   0xd   :  { %229 = vmatpush3.bf16.msra.mxu0 %v228_v19  ;;  %260 = vmatpush3.bf16.msra.mxu1 %v228_v19  ;;  %v248_v49 = vpack.c.bf16 %v36_v48, %v35_v47  ;;  %v17_v51 = vld [vmem:[%s425_s0 + $0x20] sm:$0xff]  ;;  %v16_v52 = vld [vmem:[%s425_s0 + $0x18] sm:$0xff]  ;;  %v19_v55 = vld [vmem:[%s425_s0 + $0x30] sm:$0xff] }
   0xe   :  { %231 = vmatprep.subr.bf16.mxu0 %v230_v20  ;;  %253 = vmatprep.subr.bf16.mxu1 %v230_v20  ;;  %v20_v53 = vld [vmem:[%s425_s0 + $0x38] sm:$0xff] }
  0x11   :  { %233 = vmatpush3.bf16.msra.mxu0 %v232_v27  ;;  %261 = vmatpush3.bf16.msra.mxu1 %v232_v27 }
  0x12   :  { %235 = vmatprep.subr.bf16.mxu0 %v234_v28  ;;  %254 = vmatprep.subr.bf16.mxu1 %v234_v28 }
  0x15   :  { %237 = vmatpush3.bf16.msra.mxu0 %v236_v33  ;;  %262 = vmatpush3.bf16.msra.mxu1 %v236_v33 }
  0x16   :  { %239 = vmatprep.subr.bf16.mxu0 %v238_v34  ;;  %255 = vmatprep.subr.bf16.mxu1 %v238_v34 }
  0x19   :  { %241 = vmatpush3.bf16.msra.mxu0 %v240_v39  ;;  %263 = vmatpush3.bf16.msra.mxu1 %v240_v39 }
  0x1a   :  { %243 = vmatprep.subr.bf16.mxu0 %v242_v40  ;;  %256 = vmatprep.subr.bf16.mxu1 %v242_v40 }
  0x1d   :  { %245 = vmatpush3.bf16.msra.mxu0 %v244_v45  ;;  %264 = vmatpush3.bf16.msra.mxu1 %v244_v45 }
  0x1e   :  { %247 = vmatprep.subr.bf16.mxu0 %v246_v46  ;;  %257 = vmatprep.subr.bf16.mxu1 %v246_v46 }
  0x21   :  { %249 = vmatpush3.bf16.msra.mxu0 %v248_v49  ;;  %265 = vmatpush3.bf16.msra.mxu1 %v248_v49 }
  0x24   :  { %118 = vmatmul.mubr.f32.vlgmr.msra.gmra.mrb[0].mxu0 %v13_v50  ;;  %128 = vmatmul.mubr.f32.vlgmr.msra.gmra.mrb[0].mxu1 %v17_v51 }
  0x25   :  { %122 = vmatprep.mubr.f32.mxu0 %v16_v52  ;;  %132 = vmatprep.mubr.f32.mxu1 %v20_v53 }
  0x28   :  { %123 = vmatmul.mubr.f32.gmra.mrb[2].mxu0 %v15_v54  ;;  %133 = vmatmul.mubr.f32.gmra.mrb[2].mxu1 %v19_v55 }
  0xf7   :  { %v206_v56 = vpop.f32.mrb[0].mxu0  ;;  %v212_v57 = vpop.f32.mrb[0].mxu1 }
  0xf8   :  { %v207_v58 = vpop.f32.mrb[1].mxu0  ;;  %v213_v59 = vpop.f32.mrb[1].mxu1 }
  0xf9   :  { %v208_v60 = vadd.f32 %v207_v58, %v206_v56  ;;  %v214_v61 = vadd.f32 %v213_v59, %v212_v57 }
  0xfb   :  { %138 = vst [vmem:[%s426_s2] sm:$0xff] %v208_v60  ;;  %v209_v62 = vpop.f32.mrb[2].mxu0  ;;  %140 = vst [vmem:[%s426_s2 + $0x10] sm:$0xff] %v214_v61  ;;  %v215_v63 = vpop.f32.mrb[2].mxu1  ;;  %v152_v4 = vmul.f32 %v208_v60, %v208_v60  ;;  %v154_v7 = vmul.f32 %v214_v61, %v214_v61 }
  0xfc   :  { %v210_v0 = vpop.f32.mrb[3].mxu0  ;;  %v216_v1 = vpop.f32.mrb[3].mxu1 }
  0xfd   :  { %v211_v2 = vadd.f32 %v210_v0, %v209_v62  ;;  %v217_v3 = vadd.f32 %v216_v1, %v215_v63 }
  0xff   :  { %139 = vst [vmem:[%s426_s2 + $0x8] sm:$0xff] %v211_v2  ;;  %v142_v5 = vadd.f32 %v211_v2, %v208_v60  ;;  %v153_v6 = vmul.f32 %v211_v2, %v211_v2  ;;  %141 = vst [vmem:[%s426_s2 + $0x18] sm:$0xff] %v217_v3  ;;  %v155_v10 = vmul.f32 %v217_v3, %v217_v3 }
 0x101   :  { %v156_v8 = vadd.f32 %v153_v6, %v152_v4  ;;  %v143_v9 = vadd.f32 %v214_v61, %v142_v5 }
 0x103   :  { %v144_v11 = vadd.f32 %v217_v3, %v143_v9  ;;  %v157_v12 = vadd.f32 %v156_v8, %v154_v7 }
 0x105   :  { %v145_v13 = vrot.slane %v144_v11, 4  ;;  %v158_v14 = vadd.f32 %v157_v12, %v155_v10 }
 0x107   :  { %v146_v15 = vadd.f32 %v145_v13, %v144_v11  ;;  %v159_v16 = vrot.slane %v158_v14, 4 }
 0x109   :  { %v147_v17 = vrot.slane %v146_v15, 2  ;;  %v160_v18 = vadd.f32 %v159_v16, %v158_v14 }
 0x10b   :  { %v148_v19 = vadd.f32 %v147_v17, %v146_v15  ;;  %v161_v20 = vrot.slane %v160_v18, 2 }
 0x10d   :  { %v149_v21 = vrot.slane %v148_v19, 1  ;;  %v162_v22 = vadd.f32 %v161_v20, %v160_v18 }
 0x10f   :  { %v150_v23 = vadd.f32 %v149_v21, %v148_v19  ;;  %v163_v24 = vrot.slane %v162_v22, 1 }
 0x111   :  { %151 = vst [vmem:[%s427_s3] sm:$0x1] %v150_v23  ;;  %v164_v25 = vadd.f32 %v163_v24, %v162_v22 }
 0x113   :  { %165 = vst [vmem:[%s427_s3 + $0x1] sm:$0x1] %v164_v25 }

// kernel: stem_layer_forward.7
= control target key start
LH: loop header
LB: loop body
LE: loop exit
PB: predicated region body
PF: predicated region fallthrough
CT: control target
= control target key end

     0   :  { %s90_s24 = smov [#allocation2]   ;;  %s143_s0 = inlined_call_operand.vmem [shape: f32[32,128], index: 0, kind: input, shape index: {}]   ;;  %s144_s1 = inlined_call_operand.vmem [shape: f32[1,128], index: 1, kind: input, shape index: {}]   ;;  %s145_s2 = inlined_call_operand.vmem [shape: f32[1,128], index: 2, kind: input, shape index: {}]   ;;  %s146_s3 = inlined_call_operand.hbm [shape: f32[32,128], index: 3, kind: output, shape index: {}]  }
   0x1   :  { %v15_v0 = vld [vmem:[%s143_s0] sm:$0xff]  ;;  %v16_v4 = vld [vmem:[%s143_s0 + $0x8] sm:$0xff]  ;;  %v17_v5 = vld [vmem:[%s143_s0 + $0x10] sm:$0xff]  ;;  %s50_s25 = sshll.u32 %s90_s24, 4  ;;  %s51_s25 = int_to_ptr.vmem [resolvable:$true] %s50_s25 }
   0x2   :  { %v61_v1 = vld [vmem:[%s144_s1] ss:$0 sm:$0xff]  ;;  %v18_v6 = vld [vmem:[%s143_s0 + $0x18] sm:$0xff] }
   0x3   :  { %v62_v2 = vld [vmem:[%s145_s2] ss:$0 sm:$0xff]  ;;  %v26_v3 = vmul.f32 %v61_v1, %v15_v0  ;;  %v27_v7 = vmul.f32 %v61_v1, %v16_v4  ;;  %v28_v8 = vmul.f32 %v61_v1, %v17_v5  ;;  %v29_v9 = vmul.f32 %v61_v1, %v18_v6 }
   0x4   :  { %8 = vsyncpa [#allocation3], 0  ;;  %s66_s1 = scalar_lea.vmem %s51_s25, 512  ;;  %p71_p1 = scmp.lt.s32.totalorder %s51_s25, %s51_s25 }
   0x5   :  { %v37_v10 = vadd.f32 %v62_v2, %v26_v3  ;;  %v38_v11 = vadd.f32 %v62_v2, %v27_v7  ;;  %v39_v12 = vadd.f32 %v62_v2, %v28_v8  ;;  %v40_v13 = vadd.f32 %v62_v2, %v29_v9  ;;  %p67_p0 = scmp.ne.s32.totalorder %s51_s25, %s66_s1  ;;  %p72_p2 = scmp.lt.s32.totalorder %s66_s1, %s66_s1 }
   0x7   :  { %41 = vst [vmem:[#allocation2] sm:$0xff] %v37_v10  ;;  %42 = vst [vmem:[#allocation2 + $0x8] sm:$0xff] %v38_v11  ;;  %p73_p3 = por %p72_p2, %p71_p1 }
   0x8   :  { %43 = vst [vmem:[#allocation2 + $0x10] sm:$0xff] %v39_v12  ;;  %44 = vst [vmem:[#allocation2 + $0x18] sm:$0xff] %v40_v13 }
   0x9   :  { %p74_p4 = pnand %p73_p3, %p67_p0 }
   0xb   :  { %77 = shalt.err (!%p74_p4)
}
   0xc   :  { %s78_s26 = scalar_lea.hbm %s146_s3, 512 }
   0xd   :  { %p79_p5 = scmp.ne.s32.totalorder %s146_s3, %s78_s26  ;;  %p82_p6 = scmp.lt.u32.totalorder %s78_s26, %s146_s3 }
   0xf   :  { %p84_p7 = pnand %p82_p6, %p79_p5 }
  0x11   :  { %87 = shalt.err (!%p84_p7)
}
  0x12   :  { %s91_s4 = smov 128   ;;  %s92_s5 = smov 8  }
  0x13   :  { %56 = dma.vmem_to_hbm [thread:$0]  %s51_s25, 512, %s146_s3, [#allocation3], %s91_s4, %s91_s4, %s92_s5  }
  0x14   :  { %88 = dma.done.wait [#allocation3], 512  }
  0x15   :  { %89 = vsyncadd [#allocation3], 4294966784 }
  0x16   :  { %60 = vsyncpa [#allocation3], 1 }

</bundles_post_ra>
